<compile_context>
chip_gen: v6e
topology: v6e:2x2x1
jax: 0.10.0
libtpu: 0.0.40
codegen_flags: <defaults>
</compile_context>

<pallas_src>
import jax
import jax.numpy as jnp
from jax.experimental import pallas as pl
from jax.experimental.pallas import tpu as pltpu

_LANE = 128  # vreg lane width


def _tpu_vmem_bytes() -> int:
    """Physical VMEM per core; conservative fallback if the query fails."""
    try:
        return int(pltpu.get_tpu_info().vmem_capacity_bytes)
    except Exception:
        return 64 << 20  # v7x per-TC physical VMEM (smallest of the targets)


def _pick_tile_rows(itemsize: int) -> int:
    """Default row tile: ~4 MiB/operand on v6e/v7x, capped so that
    3 operands x 2 pipeline buffers stay well inside physical VMEM."""
    vmem = _tpu_vmem_bytes()
    per_buffer = (vmem * 3 // 8) // 6          # 3 operands x 2 buffers
    rows = per_buffer // (_LANE * itemsize)
    return max(512, min(8192, (rows // 8) * 8))


def _vmem_limit(block_bytes: int) -> int:
    """Scoped-VMEM request: 3 operands x 2 buffers + slack, capped below phys."""
    want = 6 * block_bytes + (4 << 20)
    want = max(want, 16 << 20)
    return int(min(want, _tpu_vmem_bytes() - (4 << 20)))


def _weighted_avg_kernel(alpha_ref, p_text_ref, p_image_ref, out_ref):
    # alpha_ref: (1,) f32 scalar-prefetch operand in SMEM (already sigmoid'ed).
    a = alpha_ref[0]
    pt = p_text_ref[...]
    pi = p_image_ref[...]
    out_ref[...] = ((1.0 - a) * pt + a * pi).astype(out_ref.dtype)


def weighted_average(p_text: jax.Array, p_image: jax.Array, raw_alpha: jax.Array,
                     *, tile_rows: int | None = None) -> jax.Array:
    """Pallas-backed forward of WeightedAverage.

    p_text, p_image: same shape/dtype (e.g. NCHW float32 probability maps).
    raw_alpha: shape (1,) (or 0-d) float32 learnable scalar (pre-sigmoid).
    """
    assert p_text.shape == p_image.shape
    assert p_text.dtype == p_image.dtype
    orig_shape = p_text.shape
    n = p_text.size
    itemsize = jnp.dtype(p_text.dtype).itemsize

    # Hoist the scalar sigmoid out of the hot loop (one tiny op per call).
    alpha = jax.nn.sigmoid(jnp.asarray(raw_alpha, dtype=jnp.float32).reshape(1))

    if tile_rows is None:
        tile_rows = _pick_tile_rows(itemsize)
    tile_rows = max(8, (int(tile_rows) // 8) * 8)   # always a multiple of 8

    cost = pl.CostEstimate(flops=3 * n, transcendentals=0,
                           bytes_accessed=3 * n * itemsize)
    params = lambda block_bytes: pltpu.CompilerParams(   # noqa: E731
        dimension_semantics=("parallel",),
        vmem_limit_bytes=_vmem_limit(block_bytes))

    if n % _LANE == 0:
        # ---- Fast path: lane-dense (rows, 128) slab, free contiguous reshape.
        rows = n // _LANE
        pt2 = p_text.reshape(rows, _LANE)
        pi2 = p_image.reshape(rows, _LANE)

        if rows > tile_rows:
            tr = tile_rows
        else:
            # Split single-block inputs into >= 2 blocks (multiple of 8 rows)
            # so the parallel grid axis can shard across v7x's two TCs.
            half = ((pl.cdiv(rows, 2) + 7) // 8) * 8
            tr = half if half < rows else rows
        grid = (pl.cdiv(rows, tr),)
        block_bytes = tr * _LANE * itemsize

        out2 = pl.pallas_call(
            _weighted_avg_kernel,
            out_shape=jax.ShapeDtypeStruct((rows, _LANE), p_text.dtype),
            grid_spec=pltpu.PrefetchScalarGridSpec(
                num_scalar_prefetch=1,   # alpha -> SMEM before the grid runs
                grid=grid,
                in_specs=[
                    pl.BlockSpec((tr, _LANE), lambda i, _a: (i, 0)),
                    pl.BlockSpec((tr, _LANE), lambda i, _a: (i, 0)),
                ],
                out_specs=pl.BlockSpec((tr, _LANE), lambda i, _a: (i, 0)),
            ),
            compiler_params=params(block_bytes),
            cost_estimate=cost,
        )(alpha, pt2, pi2)
        return out2.reshape(orig_shape)

    # ---- Ragged path (numel % 128 != 0): run on the flat 1-D arrays directly.
    # No jnp.pad, no output slice; Pallas masks the partial tail block.
    flat_t = p_text.reshape(-1)
    flat_i = p_image.reshape(-1)
    block_elems = tile_rows * _LANE
    be = n if n <= block_elems else block_elems   # full-array block if it fits
    grid = (pl.cdiv(n, be),)
    block_bytes = be * itemsize

    out1 = pl.pallas_call(
        _weighted_avg_kernel,
        out_shape=jax.ShapeDtypeStruct((n,), p_text.dtype),
        grid_spec=pltpu.PrefetchScalarGridSpec(
            num_scalar_prefetch=1,
            grid=grid,
            in_specs=[
                pl.BlockSpec((be,), lambda i, _a: (i,)),
                pl.BlockSpec((be,), lambda i, _a: (i,)),
            ],
            out_specs=pl.BlockSpec((be,), lambda i, _a: (i,)),
        ),
        compiler_params=params(block_bytes),
        cost_estimate=cost,
    )(alpha, flat_t, flat_i)
    return out1.reshape(orig_shape)


if __name__ == "__main__":
    key = jax.random.PRNGKey(0)
    k1, k2, k3, k4 = jax.random.split(key, 4)

    # Deterministic parameter init (matches module __init__ default 0.0).
    raw_alpha = jnp.array([0.0], dtype=jnp.float32)
    alpha_val = jax.nn.sigmoid(raw_alpha)[0]

    # Small NCHW case (fast path: numel % 128 == 0; split into 2 blocks).
    B, C, H, W = 2, 4, 16, 16
    p_text = jax.random.uniform(k1, (B, C, H, W), dtype=jnp.float32)
    p_image = jax.random.uniform(k2, (B, C, H, W), dtype=jnp.float32)
    fused = jax.block_until_ready(weighted_average(p_text, p_image, raw_alpha))
    ref = (1.0 - alpha_val) * p_text + alpha_val * p_image
    assert fused.shape == p_text.shape
    assert jnp.allclose(fused, ref, atol=1e-6, rtol=1e-6)

    # Ragged case (numel % 128 != 0): 1-D path, single full-array block,
    # no pad / no slice.
    pt_r = jax.random.uniform(k3, (2, 3, 17, 19), dtype=jnp.float32)
    pi_r = jax.random.uniform(k4, (2, 3, 17, 19), dtype=jnp.float32)
    fused_r = jax.block_until_ready(weighted_average(pt_r, pi_r, raw_alpha))
    ref_r = (1.0 - alpha_val) * pt_r + alpha_val * pi_r
    assert fused_r.shape == pt_r.shape
    assert jnp.allclose(fused_r, ref_r, atol=1e-6, rtol=1e-6)

    # Multi-block case (exercises pipelining + masked partial tail block).
    pt_m = jax.random.uniform(k1, (4, 4, 64, 128), dtype=jnp.float32)
    pi_m = jax.random.uniform(k2, (4, 4, 64, 128), dtype=jnp.float32)
    fused_m = jax.block_until_ready(
        weighted_average(pt_m, pi_m, raw_alpha, tile_rows=240))
    ref_m = (1.0 - alpha_val) * pt_m + alpha_val * pi_m
    assert jnp.allclose(fused_m, ref_m, atol=1e-6, rtol=1e-6)

    print("KERNEL_OK")
</pallas_src>

<mosaic_0001>
module attributes {stable_mosaic.version = 11 : i64} {
  func.func @_weighted_avg_kernel(%arg0: i32, %arg1: memref<1xf32, #tpu.memory_space<smem>>, %arg2: memref<8x128xf32, #tpu.memory_space<vmem>>, %arg3: memref<8x128xf32, #tpu.memory_space<vmem>>, %arg4: memref<8x128xf32, #tpu.memory_space<vmem>>) attributes {dimension_semantics = [#tpu.dimension_semantics<parallel>], iteration_bounds = array<i64: 2>, scalar_prefetch = 1 : i64, scratch_operands = 0 : i64, tpu.core_type = #tpu.core_type<tc>, window_params = [{transform_indices = @transform_0, window_bounds = array<i64: 8, 128>}, {transform_indices = @transform_1, window_bounds = array<i64: 8, 128>}, {transform_indices = @transform_2, window_bounds = array<i64: 8, 128>}]} {
    %c0 = arith.constant 0 : index
    %0 = memref.load %arg1[%c0] : memref<1xf32, #tpu.memory_space<smem>>
    %c0_0 = arith.constant 0 : index
    %c0_1 = arith.constant 0 : index
    %1 = vector.load %arg2[%c0_0, %c0_1] : memref<8x128xf32, #tpu.memory_space<vmem>>, vector<8x128xf32>
    %c0_2 = arith.constant 0 : index
    %c0_3 = arith.constant 0 : index
    %2 = vector.load %arg3[%c0_2, %c0_3] : memref<8x128xf32, #tpu.memory_space<vmem>>, vector<8x128xf32>
    %cst = arith.constant 1.000000e+00 : f32
    %3 = arith.subf %cst, %0 : f32
    %4 = vector.broadcast %3 : f32 to vector<8x128xf32>
    %5 = arith.mulf %4, %1 : vector<8x128xf32>
    %6 = vector.broadcast %0 : f32 to vector<8x128xf32>
    %7 = arith.mulf %6, %2 : vector<8x128xf32>
    %8 = arith.addf %5, %7 : vector<8x128xf32>
    %c0_4 = arith.constant 0 : index
    %c0_5 = arith.constant 0 : index
    %9 = vector.load %arg4[%c0_4, %c0_5] : memref<8x128xf32, #tpu.memory_space<vmem>>, vector<8x128xf32>
    tpu.vector_store %arg4[%c0_4, %c0_5], %8 {strides = array<i32>} : memref<8x128xf32, #tpu.memory_space<vmem>>, vector<8x128xf32>,
    return
  }
  func.func @transform_0(%arg0: i32, %arg1: memref<1xf32, #tpu.memory_space<smem>>) -> (i32, i32) {
    %c0_i32 = arith.constant 0 : i32
    %c0_i32_0 = arith.constant 0 : i32
    return %arg0, %c0_i32 : i32, i32
  }
  func.func @transform_1(%arg0: i32, %arg1: memref<1xf32, #tpu.memory_space<smem>>) -> (i32, i32) {
    %c0_i32 = arith.constant 0 : i32
    %c0_i32_0 = arith.constant 0 : i32
    return %arg0, %c0_i32 : i32, i32
  }
  func.func @transform_2(%arg0: i32, %arg1: memref<1xf32, #tpu.memory_space<smem>>) -> (i32, i32) {
    %c0_i32 = arith.constant 0 : i32
    %c0_i32_0 = arith.constant 0 : i32
    return %arg0, %c0_i32 : i32, i32
  }
}

</mosaic_0001>

<bundles_post_ra>
// kernel: tpu_custom_call.1
= control target key start
LH: loop header
LB: loop body
LE: loop exit
PB: predicated region body
PF: predicated region fallthrough
CT: control target
= control target key end

     0   :  { %s727_s0 = inlined_call_operand.<no memory space> [shape: f32[1], index: 0, kind: input, shape index: {}]   ;;  %s728_s1 = inlined_call_operand.hbm [shape: f32[16,128], index: 1, kind: input, shape index: {}]   ;;  %s729_s2 = inlined_call_operand.hbm [shape: f32[16,128], index: 2, kind: input, shape index: {}]   ;;  %s730_s3 = inlined_call_operand.hbm [shape: f32[16,128], index: 3, kind: output, shape index: {}]  }
   0x1   :  { %8 = sst [smem:[#allocation3]] %s727_s0 }
   0x2   :  { %9 = vsyncpa [#allocation5], 0 }
   0x3   :  { %11 = vsyncpa [#allocation5 + $0x1], 0 }
   0x4   :  { %12 = vsyncpa [#allocation8], 0 }
   0x5   :  { %14 = vsyncpa [#allocation8 + $0x1], 0 }
   0x6   :  { %15 = vsyncpa [#allocation6], 0 }
   0x7   :  { %17 = vsyncpa [#allocation6 + $0x1], 0  ;;  %s533_s14 = smov 0   ;;  %s535_s15 = smov 0  }
   0x8   :  { %s537_s16 = smov 0   ;;  %s539_s17 = smov 0  }
   0x9 LB: > { %s554_s0 = sadd.s32 4294967295, %s505_s17   ;;  %s315_s18 = sadd.s32 4294967294, %s505_s17   ;;  %s505_s17 = sphi %s539_s17, %s749_s17   ;;  %s501_s16 = sphi %s537_s16, %s748_s16   ;;  %s497_s15 = sphi %s535_s15, %s747_s15   ;;  %s493_s14 = sphi %s533_s14, %s746_s14  }
   0xa   : > { %s558_s19 = sadd.s32 1, %s505_s17   ;;  %s30_s20 = sadd.s32 1, %s501_s16 }
   0xb   : > { %s27_s21 = ssub.s32 %s505_s17, %s558_s19  ;;  %p37_p0 = scmp.ne.s32.totalorder %s501_s16, %s497_s15 }
   0xc   : > { %p28_p1 = scmp.eq.s32.totalorder %s27_s21, 0  ;;  %p38_p2 = scmp.eq.s32.totalorder %s505_s17, 0 }
   0xd   : > { %p43_p3 = scmp.ne.s32.totalorder %s497_s15, %s493_s14  ;;  %p44_p4 = scmp.eq.s32.totalorder %s554_s0, 0 }
   0xe   : > { %s570_s22 = scalar_select %p28_p1, %s501_s16, %s30_s20  }
   0xf   : > { %p572_p5 = por %p38_p2, %p37_p0  ;;  %p576_p6 = por %p44_p4, %p43_p3 }
  0x10   : > { %p93_p7 = scmp.eq.s32.totalorder %s554_s0, 1  ;;  %p99_p8 = scmp.eq.s32.totalorder %s315_s18, 1 }
  0x11   : > { %s734_s24 = scalar_select %p576_p6, 1, 0 }
  0x12   : > { %p347_p10 = scmp.lt.s32.totalorder %s505_s17, 2  ;;  %p583_p11 = por %p93_p7, %p37_p0 }
  0x13   : > { %p587_p12 = por %p99_p8, %p43_p3  ;;  %s592_s27 = sand.u32 1, %s501_s16  }
  0x14   : > { %s735_s25 = scalar_select %p583_p11, 1, 0 }
  0x15   : > { %s736_s26 = scalar_select %p587_p12, 1, 0 }
  0x16   : > { %s319_s28 = sshll.u32 %s505_s17, 7  ;;  %s318_s29 = sshll.u32 %s592_s27, 3 }
  0x17   : > { %s601_s5 = scalar_lea.hbm %s728_s1, %s319_s28  ;;  %s123_s6 = scalar_lea.vmem [#allocation4], %s318_s29 }
  0x18   : > { %s130_s7 = sshll.u32 %s123_s6, 4  ;;  %p607_p13 = pnand %p347_p10, %p572_p5  ;;  %s611_s7 = int_to_ptr.vmem [resolvable:$true] %s130_s7 }
  0x19   : > { %s120_s9 = scalar_lea.sflag [#allocation5], %s592_s27  ;;  %s381_s10 = scalar_lea.hbm %s601_s5, 128 }
  0x1a   : > { %p382_p2 = scmp.ne.s32.totalorder %s601_s5, %s381_s10  ;;  %p383_p3 = pneg %p607_p13 }
  0x1b   : > { %s386_s13 = scalar_lea.hbm %s728_s1, 256  ;;  %p387_p5 = scmp.lt.s32.totalorder %s601_s5, %s728_s1 }
  0x1c   : > { %p384_p4 = pnand %p383_p3, %p382_p2  ;;  %p388_p8 = scmp.lt.s32.totalorder %s386_s13, %s381_s10 }
  0x1e   : > { %p385_p7 = pneg %p384_p4  ;;  %p389_p10 = por %p388_p8, %p387_p5 }
  0x20   : > { %p390_p9 = pnand %p389_p10, %p385_p7 }
  0x22   : > { %393 = shalt.err (!%p390_p9)
}
  0x23   : > { %s394_s21 = scalar_lea.vmem %s611_s7, 128  ;;  %s507_s23 = smov [#allocation4]  }
  0x24   : > { %p395_p0 = scmp.ne.s32.totalorder %s611_s7, %s394_s21  ;;  %s399_s30 = sshll.u32 %s507_s23, 4  ;;  %s400_s30 = int_to_ptr.vmem [resolvable:$false] %s399_s30 }
  0x25   : > { %s401_s4 = scalar_lea.vmem %s400_s30, 256  ;;  %p402_p1 = scmp.lt.s32.totalorder %s611_s7, %s400_s30 }
  0x26   : > { %p397_p2 = pnand %p395_p0, %p383_p3  ;;  %p403_p12 = scmp.lt.s32.totalorder %s401_s4, %s394_s21 }
  0x28   : > { %p398_p4 = pneg %p397_p2  ;;  %p404_p11 = por %p403_p12, %p402_p1 }
  0x2a   : > { %p405_p5 = pnand %p404_p11, %p398_p4 }
  0x2c   : > { %408 = shalt.err (!%p405_p5)
}
  0x2d   : > { %339 = dma.hbm_to_vmem [thread:$0]  (!%p607_p13), %s601_s5, 128, %s611_s7, %s120_s9  }
  0x2e   : > { %p738_p9 = scmp.lt.s32.totalorder %s505_s17, 3  ;;  %p739_p0 = scmp.ge.s32.totalorder %s505_s17, 1 }
  0x2f   : > { %s653_s12 = scalar_lea.hbm %s729_s2, %s319_s28  ;;  %s141_s13 = scalar_lea.vmem [#allocation7], %s318_s29 }
  0x30   : > { %p644_p7 = pnand %p739_p0, %p738_p9  ;;  %s148_s18 = sshll.u32 %s141_s13, 4  ;;  %s149_s18 = int_to_ptr.vmem [resolvable:$true] %s148_s18 }
  0x31   : > { %s138_s5 = scalar_lea.sflag [#allocation8], %s592_s27  ;;  %s409_s7 = scalar_lea.hbm %s653_s12, 128 }
  0x32   : > { %s740_s6 = scalar_select %p644_p7, 1, 0 }
  0x33   : > { %p410_p11 = scmp.ne.s32.totalorder %s653_s12, %s409_s7  ;;  %s414_s21 = scalar_lea.hbm %s729_s2, 256 }
  0x34   : > { %p415_p8 = scmp.lt.s32.totalorder %s653_s12, %s729_s2  ;;  %p416_p10 = scmp.lt.s32.totalorder %s414_s21, %s409_s7 }
  0x35   : > { %p412_p12 = pnand %p410_p11, %p383_p3 }
  0x36   : > { %p417_p2 = por %p416_p10, %p415_p8 }
  0x37   : > { %p413_p1 = pneg %p412_p12 }
  0x39   : > { %p418_p4 = pnand %p417_p2, %p413_p1 }
  0x3b   : > { %421 = shalt.err (!%p418_p4)
}
  0x3c   : > { %s422_s29 = scalar_lea.vmem %s149_s18, 128  ;;  %s508_s27 = smov [#allocation7]  }
  0x3d   : > { %p423_p5 = scmp.ne.s32.totalorder %s149_s18, %s422_s29  ;;  %s427_s30 = sshll.u32 %s508_s27, 4  ;;  %s428_s30 = int_to_ptr.vmem [resolvable:$false] %s427_s30 }
  0x3e   : > { %s429_s4 = scalar_lea.vmem %s428_s30, 256  ;;  %p430_p11 = scmp.lt.s32.totalorder %s149_s18, %s428_s30 }
  0x3f   : > { %p425_p9 = pnand %p423_p5, %p383_p3  ;;  %p431_p12 = scmp.lt.s32.totalorder %s429_s4, %s422_s29 }
  0x41   : > { %p426_p0 = pneg %p425_p9  ;;  %p432_p6 = por %p431_p12, %p430_p11 }
  0x43   : > { %p433_p7 = pnand %p432_p6, %p426_p0 }
  0x45   : > { %436 = shalt.err (!%p433_p7)
}
  0x46   : > { %342 = dma.hbm_to_vmem [thread:$0]  (!%p607_p13), %s653_s12, 128, %s149_s18, %s138_s5  }
  0x47   : > { %p741_p1 = scmp.ne.s32.totalorder %s740_s6, 0 }
  0x48   : > { %s679_s10 = sand.u32 (!%p741_p1), 1, %s497_s15   ;;  %p742_p3 = scmp.ne.s32.totalorder (!%p741_p1), %s734_s24, 0 }
  0x49   : > { %157 = sbr.rel (%p741_p1) target bundleno = 107 (0x6b), region = 28  ;;  %s323_s11 = sshll.u32 (!%p741_p1), %s679_s10, 3 }
  0x4a   : > { %s160_s13 = scalar_lea.sflag (!%p741_p1), [#allocation5], %s679_s10  ;;  %s163_s7 = scalar_lea.vmem (!%p741_p1), [#allocation4], %s323_s11 }
  0x4e   : > { %480 = dma.done.wait (%p742_p3), %s160_s13, 128  }
  0x4f   : > { %482 = vsyncadd (%p742_p3), %s160_s13, 4294967168  ;;  %s169_s8 = scalar_lea.sflag [#allocation8], %s679_s10  ;;  %s172_s12 = scalar_lea.vmem [#allocation7], %s323_s11 }
  0x50   : > { %484 = dma.done.wait (%p742_p3), %s169_s8, 128  }
  0x51   : > { %486 = vsyncadd (%p742_p3), %s169_s8, 4294967168  ;;  %s198_s6 = sld [smem:[#allocation3]]  ;;  %v199_v0 = vld [vmem:[%s163_s7] sm:$0xff]  ;;  %v200_v1 = vld [vmem:[%s172_s12] sm:$0xff]  ;;  %s197_s5 = scalar_lea.vmem [#allocation9], %s323_s11 }
  0x52   : > { %s222_s9 = sshll.u32 %s197_s5, 4  ;;  %s327_s20 = sshll.u32 %s554_s0, 7  ;;  %s223_s9 = int_to_ptr.vmem [resolvable:$true] %s222_s9 }
  0x53   : > { %s220_s24 = scalar_lea.hbm %s730_s3, %s327_s20  ;;  %s209_s23 = scalar_lea.sflag [#allocation6], %s679_s10 }
  0x54   : > { %s437_s29 = scalar_lea.vmem %s223_s9, 128  ;;  %p743_p13 = scmp.ne.s32.totalorder %s735_s25, 0 }
  0x55   : > { %p438_p6 = scmp.ne.s32.totalorder %s223_s9, %s437_s29  ;;  %s509_s27 = smov [#allocation9]  }
  0x56   : > { %s441_s30 = sshll.u32 %s509_s27, 4  ;;  %s442_s30 = int_to_ptr.vmem [resolvable:$false] %s441_s30 }
  0x57   : > { %s201_s18 = ssub.f32 1.0, %s198_s6  ;;  %v204_v2 = vstv %s198_s6  ;;  %p439_p7 = pnand %p438_p6, %p743_p13 }
  0x58   : > { %v205_v3 = vmul.f32 %v204_v2, %v200_v1  ;;  %s443_s4 = scalar_lea.vmem %s442_s30, 256  ;;  %p444_p10 = scmp.lt.s32.totalorder %s223_s9, %s442_s30 }
  0x59   : > { %v202_v4 = vstv %s201_s18  ;;  %p440_p8 = pneg %p439_p7  ;;  %p445_p2 = scmp.lt.s32.totalorder %s443_s4, %s437_s29 }
  0x5a   : > { %v203_v5 = vmul.f32 %v202_v4, %v199_v0 }
  0x5b   : > { %p446_p4 = por %p445_p2, %p444_p10 }
  0x5c   : > { %v206_v6 = vadd.f32 %v205_v3, %v203_v5 }
  0x5d   : > { %p447_p5 = pnand %p446_p4, %p440_p8 }
  0x5e   : > { %207 = vst [vmem:[%s197_s5] sm:$0xff] %v206_v6 }
  0x5f   : > { %450 = shalt.err (!%p447_p5)
}
  0x60   : > { %s451_s0 = scalar_lea.hbm %s220_s24, 128  ;;  %s455_s13 = scalar_lea.hbm %s730_s3, 256 }
  0x61   : > { %p452_p9 = scmp.ne.s32.totalorder %s220_s24, %s451_s0  ;;  %p456_p12 = scmp.lt.s32.totalorder %s220_s24, %s730_s3 }
  0x62   : > { %p457_p1 = scmp.lt.s32.totalorder %s455_s13, %s451_s0 }
  0x63   : > { %p453_p0 = pnand %p452_p9, %p743_p13 }
  0x64   : > { %p458_p3 = por %p457_p1, %p456_p12 }
  0x65   : > { %p454_p11 = pneg %p453_p0 }
  0x67   : > { %p459_p6 = pnand %p458_p3, %p454_p11 }
  0x69   : > { %462 = shalt.err (!%p459_p6)
}
  0x6a   : > { %334 = dma.vmem_to_hbm [thread:$0]  (%p743_p13), %s223_s9, 128, %s220_s24, %s209_s23  }
  0x6b PF: > { %s234_s12 = sand.u32 1, %s493_s14   ;;  %p744_p7 = scmp.ne.s32.totalorder %s736_s26, 0 }
  0x6c   : > { %p745_p8 = scmp.ge.s32.totalorder %s505_s17, 2  ;;  %s235_s6 = scalar_lea.sflag [#allocation6], %s234_s12 }
  0x6e   : > { %p344_p10 = pnand %p745_p8, %p744_p7 }
  0x70   : > { %p345_p2 = pneg %p344_p10 }
  0x72   : > { %488 = dma.done.wait (%p345_p2), %s235_s6, 128  }
  0x73   : > { %490 = vsyncadd (%p345_p2), %s235_s6, 4294967168  ;;  %p20_p4 = scmp.ge.s32.totalorder %s558_s19, 4   ;;  %s746_s14 = smov %s497_s15 }
  0x74   : > { %s747_s15 = smov %s501_s16  ;;  %s748_s16 = smov %s570_s22 }
  0x75   : > { %s749_s17 = smov %s558_s19  ;;  %22 = sbr.rel (!%p20_p4) target bundleno = 9 (0x9), region = 86 }
  0x7a   :  { %240 = vsyncpa [#allocation5], 1 }
  0x7b   :  { %242 = vsyncpa [#allocation5 + $0x1], 1 }
  0x7c   :  { %243 = vsyncpa [#allocation8], 1 }
  0x7d   :  { %245 = vsyncpa [#allocation8 + $0x1], 1 }
  0x7e   :  { %246 = vsyncpa [#allocation6], 1 }
  0x7f   :  { %248 = vsyncpa [#allocation6 + $0x1], 1 }

</bundles_post_ra>
